<compile_context>
chip_gen: v7x
topology: tpu7x:2x2x1
jax: 0.10.0
libtpu: 0.0.40
codegen_flags: <defaults>
</compile_context>

<pallas_src>
import jax
import jax.numpy as jnp
from jax.experimental import pallas as pl
from jax.experimental.pallas import tpu as pltpu

HIDDEN = 256
MAX_BLOCK_B = 1024  # review-sanctioned 1024-2048; keeps f32 (256, TB) temporaries ~1 MiB.


def _cdiv(a, b):
    return -(-a // b)


def _round_up(a, m):
    return _cdiv(a, m) * m


def q_net_kernel(x_ref, w1t_ref, b1_ref, w2t_ref, b2_ref, w3_ref, b3_ref, o_ref):
    """One (net, batch-tile) grid step of the 3-layer MLP, computed feature-major.

    x_ref  : (D, TB)    f32  VMEM  batch tile of x^T (bf16 cast happens in-kernel)
    w1t_ref: (256, D)   bf16 VMEM  W1^T, resident across batch tiles
    b1_ref : (256, 1)   f32  VMEM
    w2t_ref: (256, 256) bf16 VMEM  W2^T, resident across batch tiles
    b2_ref : (256, 1)   f32  VMEM
    w3_ref : (8, 256)   bf16 VMEM  row 0 = w3^T, rows 1..7 zero (MXU-friendly M=8)
    b3_ref : (N,)       f32  SMEM  per-net output bias
    o_ref  : (1, TB)    f32  VMEM  lane-dense Q row for this (net, tile)
    """
    x = x_ref[...].astype(jnp.bfloat16)  # in-kernel cast: no separate wrapper pass over x

    # Layer 1: (256, D) @ (D, TB) -> (256, TB); bf16 MXU, f32 accumulation.
    h1 = jnp.dot(w1t_ref[...], x, preferred_element_type=jnp.float32)
    h1 = jnp.maximum(h1 + b1_ref[...], 0.0)  # bias/ReLU stay f32 (v5e VPU has no bf16)

    # Layer 2: (256, 256) @ (256, TB) -> (256, TB).
    h2 = jnp.dot(w2t_ref[...], h1.astype(jnp.bfloat16),
                 preferred_element_type=jnp.float32)
    h2 = jnp.maximum(h2 + b2_ref[...], 0.0)

    # Layer 3 (256 -> 1): MXU dot against the zero-padded (8, 256) w3^T.  Row 0 of the
    # result is Q, already lane-dense -- no XLU lane-reduce, no sublane->lane relayout.
    q = jnp.dot(w3_ref[...], h2.astype(jnp.bfloat16),
                preferred_element_type=jnp.float32)  # (8, TB)
    o_ref[...] = q[0:1, :] + b3_ref[pl.program_id(0)]


@jax.jit
def q_net_apply_stacked(x, params):
    """Fused forward of `num_nets` stacked Q-nets.

    x      : (B, D) f32 row-major; transposed once here (D is tiny, cost negligible).
    params : stacked kernel-layout params from `prepare_params`.
    returns: (num_nets, B) f32 Q-values.
    """
    w1t, b1, w2t, b2, w3, b3 = params
    num_nets, h, d = w1t.shape
    b = x.shape[0]

    # Batch tiling: one full-size tile for B <= MAX_BLOCK_B (no padding needed, since a
    # full-extent block dim is exempt from the 128-lane divisibility rule); otherwise
    # ~equal tiles rounded up to a multiple of 256 (full MXU columns on v6e/v7x).
    if b <= MAX_BLOCK_B:
        num_tiles, block_b, b_pad = 1, b, b
        x_t = x.T                                         # (D, B)
    else:
        num_tiles = _cdiv(b, MAX_BLOCK_B)
        block_b = _round_up(_cdiv(b, num_tiles), 256)
        b_pad = num_tiles * block_b
        x_t = jnp.pad(x, ((0, b_pad - b), (0, 0))).T      # (D, b_pad)

    cost = pl.CostEstimate(
        flops=2 * num_nets * b_pad * (d * h + h * h + 8 * h),
        transcendentals=0,
        bytes_accessed=(num_nets * b_pad * d * 4                   # f32 x^T (read per net)
                        + num_nets * (h * d + h * h + 8 * h) * 2   # bf16 weights
                        + num_nets * (2 * h + 1) * 4               # f32 biases
                        + num_nets * b_pad * 4),                   # f32 Q out
    )

    out = pl.pallas_call(
        q_net_kernel,
        out_shape=jax.ShapeDtypeStruct((num_nets, 1, b_pad), jnp.float32),
        grid=(num_nets, num_tiles),
        in_specs=[
            pl.BlockSpec((d, block_b), lambda n, i: (0, i)),       # x^T: tiled over batch
            pl.BlockSpec((None, h, d), lambda n, i: (n, 0, 0)),    # W1^T: resident per net
            pl.BlockSpec((None, h, 1), lambda n, i: (n, 0, 0)),    # b1
            pl.BlockSpec((None, h, h), lambda n, i: (n, 0, 0)),    # W2^T: resident per net
            pl.BlockSpec((None, h, 1), lambda n, i: (n, 0, 0)),    # b2
            pl.BlockSpec((None, 8, h), lambda n, i: (n, 0, 0)),    # zero-padded w3^T
            pl.BlockSpec(memory_space=pltpu.MemorySpace.SMEM),     # b3 scalars (all nets)
        ],
        out_specs=pl.BlockSpec((None, 1, block_b), lambda n, i: (n, 0, i)),  # lane-dense Q
        compiler_params=pltpu.CompilerParams(
            dimension_semantics=("parallel", "parallel")),         # nets x batch tiles
        cost_estimate=cost,
    )(x_t, w1t, b1, w2t, b2, w3, b3)

    return out[:, 0, :b]


def q_net_apply(x, params):
    """Single-net batched forward: x (B, D) f32 -> (B,) f32 (params must hold one net)."""
    return q_net_apply_stacked(x, params)[0]


def q_net_forward(obs, action, params):
    """Matches Q_net.forward: 1-D obs/action concatenated on dim 0 -> Q of shape (1,)."""
    x = jnp.concatenate([obs, action], axis=0)[None, :]  # glue: torch.cat([obs, action], 0)
    return q_net_apply(x, params)


def init_params(key, obs_dim, action_dim, hidden=HIDDEN):
    """PyTorch-style U(-1/sqrt(fan_in), +1/sqrt(fan_in)) init; f32, weights as (in, out)."""
    d_in = obs_dim + action_dim
    dims = [(d_in, hidden), (hidden, hidden), (hidden, 1)]
    raw = []
    for fan_in, fan_out in dims:
        key, kw, kb = jax.random.split(key, 3)
        bound = 1.0 / float(fan_in) ** 0.5
        raw.append(jax.random.uniform(kw, (fan_in, fan_out), jnp.float32, -bound, bound))
        raw.append(jax.random.uniform(kb, (fan_out,), jnp.float32, -bound, bound))
    return tuple(raw)  # (w1, b1, w2, b2, w3, b3)


def prepare_params(*nets):
    """Stack one or more raw (w1, b1, w2, b2, w3, b3) nets into the fused kernel layout.

    Weights become feature-major bf16 (W^T); biases become f32 (256, 1) columns; the
    (256, 1) head weight is zero-padded into an (8, 256) bf16 row block; b3 -> (N,) f32.
    """
    f32, bf16 = jnp.float32, jnp.bfloat16
    w1t = jnp.stack([n[0].T.astype(bf16) for n in nets])             # (N, 256, D)
    b1 = jnp.stack([n[1][:, None].astype(f32) for n in nets])        # (N, 256, 1)
    w2t = jnp.stack([n[2].T.astype(bf16) for n in nets])             # (N, 256, 256)
    b2 = jnp.stack([n[3][:, None].astype(f32) for n in nets])        # (N, 256, 1)
    w3 = jnp.stack([
        jnp.concatenate([n[4].reshape(1, -1),
                         jnp.zeros((7, n[4].shape[0]), n[4].dtype)], axis=0).astype(bf16)
        for n in nets])                                              # (N, 8, 256)
    b3 = jnp.stack([n[5].reshape(()).astype(f32) for n in nets])     # (N,)
    return w1t, b1, w2t, b2, w3, b3


def reference_apply(x, net):
    """Pure-JAX reference at matching precision (bf16 matmul operands, f32 accum/bias/ReLU)."""
    w1, b1, w2, b2, w3, b3 = net
    bf16, f32 = jnp.bfloat16, jnp.float32
    h1 = jnp.maximum(
        jnp.dot(x.astype(bf16), w1.astype(bf16), preferred_element_type=f32) + b1, 0.0)
    h2 = jnp.maximum(
        jnp.dot(h1.astype(bf16), w2.astype(bf16), preferred_element_type=f32) + b2, 0.0)
    return jnp.dot(h2.astype(bf16), w3.astype(bf16), preferred_element_type=f32)[:, 0] + b3[0]


if __name__ == "__main__":
    obs_dim, action_dim = 16, 8
    key = jax.random.PRNGKey(0)
    k_obs, k_act, k_p1, k_p2, k_bobs, k_bact, k_big = jax.random.split(key, 7)

    net1 = init_params(k_p1, obs_dim, action_dim)   # critic
    net2 = init_params(k_p2, obs_dim, action_dim)   # target critic
    params1 = prepare_params(net1)                  # single net (num_nets = 1)
    params12 = prepare_params(net1, net2)           # fused critic + target critic

    # 1) Exact Q_net.forward semantics: 1-D obs/action -> Q of shape (1,).
    obs = jax.random.normal(k_obs, (obs_dim,), jnp.float32)
    act = jax.random.normal(k_act, (action_dim,), jnp.float32)
    q1 = q_net_forward(obs, act, params1)
    jax.block_until_ready(q1)
    assert q1.shape == (1,)

    # 2) Batched + fused two-net path (single tile; B not a multiple of 128 -> no padding).
    B = 300
    obs_b = jax.random.normal(k_bobs, (B, obs_dim), jnp.float32)
    act_b = jax.random.normal(k_bact, (B, action_dim), jnp.float32)
    x_b = jnp.concatenate([obs_b, act_b], axis=-1)
    q_both = q_net_apply_stacked(x_b, params12)
    jax.block_until_ready(q_both)
    assert q_both.shape == (2, B)

    # 3) Large-batch path (exercises the multi-tile grid and batch padding).
    B2 = 2500
    x_big = jax.random.normal(k_big, (B2, obs_dim + action_dim), jnp.float32)
    q_big = q_net_apply(x_big, params1)
    jax.block_until_ready(q_big)
    assert q_big.shape == (B2,)

    # Correctness vs the pure-JAX reference at matching precision.
    def close(a, b):
        return bool(jnp.allclose(a, b, atol=1e-3, rtol=1e-3))

    x1 = jnp.concatenate([obs, act], axis=0)[None, :]
    ref1 = reference_apply(x1, net1)
    assert close(q1, ref1), float(jnp.max(jnp.abs(q1 - ref1)))
    ref_b1 = reference_apply(x_b, net1)
    ref_b2 = reference_apply(x_b, net2)
    assert close(q_both[0], ref_b1), float(jnp.max(jnp.abs(q_both[0] - ref_b1)))
    assert close(q_both[1], ref_b2), float(jnp.max(jnp.abs(q_both[1] - ref_b2)))
    ref_big = reference_apply(x_big, net1)
    assert close(q_big, ref_big), float(jnp.max(jnp.abs(q_big - ref_big)))

    print("KERNEL_OK")
</pallas_src>

<mosaic_0001>
module attributes {stable_mosaic.version = 11 : i64} {
  func.func @q_net_kernel(%arg0: i32, %arg1: i32, %arg2: memref<24x1xf32, #tpu.memory_space<vmem>>, %arg3: memref<1x256x24xbf16, #tpu.memory_space<vmem>>, %arg4: memref<1x256x1xf32, #tpu.memory_space<vmem>>, %arg5: memref<1x256x256xbf16, #tpu.memory_space<vmem>>, %arg6: memref<1x256x1xf32, #tpu.memory_space<vmem>>, %arg7: memref<1x8x256xbf16, #tpu.memory_space<vmem>>, %arg8: memref<1xf32, #tpu.memory_space<smem>>, %arg9: memref<1x1x1xf32, #tpu.memory_space<vmem>>) attributes {dimension_semantics = [#tpu.dimension_semantics<parallel>, #tpu.dimension_semantics<parallel>], iteration_bounds = array<i64: 1, 1>, scalar_prefetch = 0 : i64, scratch_operands = 0 : i64, tpu.core_type = #tpu.core_type<tc>, window_params = [{transform_indices = @transform_0, window_bounds = array<i64: 24, 1>}, {transform_indices = @transform_1, window_bounds = array<i64: 1, 256, 24>}, {transform_indices = @transform_2, window_bounds = array<i64: 1, 256, 1>}, {transform_indices = @transform_3, window_bounds = array<i64: 1, 256, 256>}, {transform_indices = @transform_4, window_bounds = array<i64: 1, 256, 1>}, {transform_indices = @transform_5, window_bounds = array<i64: 1, 8, 256>}, {transform_indices = @transform_6, window_bounds = array<i64: 1>}, {transform_indices = @transform_7, window_bounds = array<i64: 1, 1, 1>}]} {
    %c0 = arith.constant 0 : index
    %c0_0 = arith.constant 0 : index
    %0 = vector.load %arg2[%c0, %c0_0] : memref<24x1xf32, #tpu.memory_space<vmem>>, vector<24x1xf32>
    %1 = arith.truncf %0 : vector<24x1xf32> to vector<24x1xbf16>
    %c0_1 = arith.constant 0 : index
    %c0_2 = arith.constant 0 : index
    %c0_3 = arith.constant 0 : index
    %2 = vector.load %arg3[%c0_1, %c0_2, %c0_3] : memref<1x256x24xbf16, #tpu.memory_space<vmem>>, vector<1x256x24xbf16>
    %3 = vector.shape_cast %2 : vector<1x256x24xbf16> to vector<256x24xbf16>
    %cst = arith.constant dense<0.000000e+00> : vector<256x1xf32>
    %4 = tpu.matmul %3, %1, %cst {dimension_numbers = #tpu.dot_dimension_numbers<[1], [0], [0], [1], [0, 0, 1, 1], [], []>} : vector<256x24xbf16>, vector<24x1xbf16>, vector<256x1xf32> -> vector<256x1xf32>
    %c0_4 = arith.constant 0 : index
    %c0_5 = arith.constant 0 : index
    %c0_6 = arith.constant 0 : index
    %5 = vector.load %arg4[%c0_4, %c0_5, %c0_6] : memref<1x256x1xf32, #tpu.memory_space<vmem>>, vector<1x256x1xf32>
    %6 = vector.shape_cast %5 : vector<1x256x1xf32> to vector<256x1xf32>
    %7 = arith.addf %4, %6 : vector<256x1xf32>
    %cst_7 = arith.constant 0.000000e+00 : f32
    %8 = vector.broadcast %cst_7 : f32 to vector<256x1xf32>
    %9 = arith.maximumf %7, %8 : vector<256x1xf32>
    %c0_8 = arith.constant 0 : index
    %c0_9 = arith.constant 0 : index
    %c0_10 = arith.constant 0 : index
    %10 = vector.load %arg5[%c0_8, %c0_9, %c0_10] : memref<1x256x256xbf16, #tpu.memory_space<vmem>>, vector<1x256x256xbf16>
    %11 = vector.shape_cast %10 : vector<1x256x256xbf16> to vector<256x256xbf16>
    %12 = arith.truncf %9 : vector<256x1xf32> to vector<256x1xbf16>
    %cst_11 = arith.constant dense<0.000000e+00> : vector<256x1xf32>
    %13 = tpu.matmul %11, %12, %cst_11 {dimension_numbers = #tpu.dot_dimension_numbers<[1], [0], [0], [1], [0, 0, 1, 1], [], []>} : vector<256x256xbf16>, vector<256x1xbf16>, vector<256x1xf32> -> vector<256x1xf32>
    %c0_12 = arith.constant 0 : index
    %c0_13 = arith.constant 0 : index
    %c0_14 = arith.constant 0 : index
    %14 = vector.load %arg6[%c0_12, %c0_13, %c0_14] : memref<1x256x1xf32, #tpu.memory_space<vmem>>, vector<1x256x1xf32>
    %15 = vector.shape_cast %14 : vector<1x256x1xf32> to vector<256x1xf32>
    %16 = arith.addf %13, %15 : vector<256x1xf32>
    %cst_15 = arith.constant 0.000000e+00 : f32
    %17 = vector.broadcast %cst_15 : f32 to vector<256x1xf32>
    %18 = arith.maximumf %16, %17 : vector<256x1xf32>
    %c0_16 = arith.constant 0 : index
    %c0_17 = arith.constant 0 : index
    %c0_18 = arith.constant 0 : index
    %19 = vector.load %arg7[%c0_16, %c0_17, %c0_18] : memref<1x8x256xbf16, #tpu.memory_space<vmem>>, vector<1x8x256xbf16>
    %20 = vector.shape_cast %19 : vector<1x8x256xbf16> to vector<8x256xbf16>
    %21 = arith.truncf %18 : vector<256x1xf32> to vector<256x1xbf16>
    %cst_19 = arith.constant dense<0.000000e+00> : vector<8x1xf32>
    %22 = tpu.matmul %20, %21, %cst_19 {dimension_numbers = #tpu.dot_dimension_numbers<[1], [0], [0], [1], [0, 0, 1, 1], [], []>} : vector<8x256xbf16>, vector<256x1xbf16>, vector<8x1xf32> -> vector<8x1xf32>
    %23 = vector.extract_strided_slice %22 {offsets = [0, 0], sizes = [1, 1], strides = [1, 1]} : vector<8x1xf32> to vector<1x1xf32>
    %24 = arith.index_cast %arg0 : i32 to index
    %25 = memref.load %arg8[%24] : memref<1xf32, #tpu.memory_space<smem>>
    %26 = vector.broadcast %25 : f32 to vector<1x1xf32>
    %27 = arith.addf %23, %26 : vector<1x1xf32>
    %c0_20 = arith.constant 0 : index
    %c0_21 = arith.constant 0 : index
    %c0_22 = arith.constant 0 : index
    %28 = vector.load %arg9[%c0_20, %c0_21, %c0_22] : memref<1x1x1xf32, #tpu.memory_space<vmem>>, vector<1x1x1xf32>
    %29 = vector.shape_cast %28 : vector<1x1x1xf32> to vector<1x1xf32>
    %30 = vector.shape_cast %27 : vector<1x1xf32> to vector<1x1x1xf32>
    tpu.vector_store %arg9[%c0_20, %c0_21, %c0_22], %30 {strides = array<i32>} : memref<1x1x1xf32, #tpu.memory_space<vmem>>, vector<1x1x1xf32>,
    return
  }
  func.func @transform_0(%arg0: i32, %arg1: i32) -> (i32, i32) {
    %c0_i32 = arith.constant 0 : i32
    %c0_i32_0 = arith.constant 0 : i32
    return %c0_i32, %arg1 : i32, i32
  }
  func.func @transform_1(%arg0: i32, %arg1: i32) -> (i32, i32, i32) {
    %c0_i32 = arith.constant 0 : i32
    %c0_i32_0 = arith.constant 0 : i32
    %c0_i32_1 = arith.constant 0 : i32
    return %arg0, %c0_i32, %c0_i32_0 : i32, i32, i32
  }
  func.func @transform_2(%arg0: i32, %arg1: i32) -> (i32, i32, i32) {
    %c0_i32 = arith.constant 0 : i32
    %c0_i32_0 = arith.constant 0 : i32
    %c0_i32_1 = arith.constant 0 : i32
    return %arg0, %c0_i32, %c0_i32_0 : i32, i32, i32
  }
  func.func @transform_3(%arg0: i32, %arg1: i32) -> (i32, i32, i32) {
    %c0_i32 = arith.constant 0 : i32
    %c0_i32_0 = arith.constant 0 : i32
    %c0_i32_1 = arith.constant 0 : i32
    return %arg0, %c0_i32, %c0_i32_0 : i32, i32, i32
  }
  func.func @transform_4(%arg0: i32, %arg1: i32) -> (i32, i32, i32) {
    %c0_i32 = arith.constant 0 : i32
    %c0_i32_0 = arith.constant 0 : i32
    %c0_i32_1 = arith.constant 0 : i32
    return %arg0, %c0_i32, %c0_i32_0 : i32, i32, i32
  }
  func.func @transform_5(%arg0: i32, %arg1: i32) -> (i32, i32, i32) {
    %c0_i32 = arith.constant 0 : i32
    %c0_i32_0 = arith.constant 0 : i32
    %c0_i32_1 = arith.constant 0 : i32
    return %arg0, %c0_i32, %c0_i32_0 : i32, i32, i32
  }
  func.func @transform_6(%arg0: i32, %arg1: i32) -> i32 {
    %c0_i32 = arith.constant 0 : i32
    %c0_i32_0 = arith.constant 0 : i32
    return %c0_i32 : i32
  }
  func.func @transform_7(%arg0: i32, %arg1: i32) -> (i32, i32, i32) {
    %c0_i32 = arith.constant 0 : i32
    %c0_i32_0 = arith.constant 0 : i32
    return %arg0, %c0_i32, %arg1 : i32, i32, i32
  }
}

</mosaic_0001>

<bundles_post_ra>
// kernel: q_net_apply_stacked.1
= control target key start
LH: loop header
LB: loop body
LE: loop exit
PB: predicated region body
PF: predicated region fallthrough
CT: control target
= control target key end

     0   :  { %vm178_vm0 = vcmask 195584   ;;  %vm227_vm1 = vcmask 1043456   ;;  %s1778_s0 = inlined_call_operand.vmem [shape: f32[24,1], index: 0, kind: input, shape index: {}]   ;;  %s1779_s1 = inlined_call_operand.vmem [shape: bf16[1,256,24], index: 1, kind: input, shape index: {}]   ;;  %s1780_s2 = inlined_call_operand.vmem [shape: f32[1,256,1], index: 2, kind: input, shape index: {}]   ;;  %s1781_s3 = inlined_call_operand.vmem [shape: bf16[1,256,256], index: 3, kind: input, shape index: {}]   ;;  %s1782_s4 = inlined_call_operand.vmem [shape: f32[1,256,1], index: 4, kind: input, shape index: {}]   ;;  %s1783_s5 = inlined_call_operand.vmem [shape: bf16[1,8,256], index: 5, kind: input, shape index: {}]   ;;  %s1784_s6 = inlined_call_operand.<no memory space> [shape: f32[1], index: 6, kind: input, shape index: {}]   ;;  %s1785_s7 = inlined_call_operand.hbm [shape: f32[1,1,1], index: 7, kind: output, shape index: {}]  }
   0x1   :  { %v29_v0 = vld [vmem:[%s1778_s0] sm:$0xff]  ;;  %v30_v1 = vld [vmem:[%s1778_s0 + $0x8] sm:$0xff]  ;;  %v31_v2 = vld [vmem:[%s1778_s0 + $0x10] sm:$0xff] }
   0x2   :  { %v32_v3 = vpack.c.bf16 %v30_v1, %v29_v0  ;;  %v33_v4 = vpack.c.bf16 %v31_v2, %v31_v2  ;;  %v1212_v5 = vld [vmem:[%s1779_s1] sm:$0xff]   ;;  %v1213_v7 = vld [vmem:[%s1779_s1 + $0x8] sm:$0xff]   ;;  %v1214_v8 = vld [vmem:[%s1779_s1 + $0x10] sm:$0xff]  }
   0x3   :  { %1162 = vmatprep.mubr.msk.bf16.mxu0 %vm178_vm0, %v1212_v5  ;;  %v1215_v9 = vld [vmem:[%s1779_s1 + $0x18] sm:$0xff]   ;;  %v1216_v10 = vld [vmem:[%s1779_s1 + $0x20] sm:$0xff]   ;;  %v1217_v11 = vld [vmem:[%s1779_s1 + $0x28] sm:$0xff]  }
   0x4   :  { %1158 = vmatprep.subr.bf16.mxu0 %v32_v3  ;;  %v229_v6 = vsel %vm227_vm1, %v33_v4, 0  ;;  %v1218_v12 = vld [vmem:[%s1779_s1 + $0x30] sm:$0xff]  }
   0x5   :  { %1159 = vmatpush3.bf16.msra.mxu0 %v32_v3 }
   0x6   :  { %1210 = vmatprep.subr.msk.bf16.mxu0 %vm227_vm1, %v33_v4 }
   0x9   :  { %1161 = vmatpush3.bf16.msra.mxu0 %v229_v6 }
   0xc   :  { %1163 = vmatmul.mubr.msk.bf16.vlgmr.msra.gmra.mrb[0].mxu0 %vm178_vm0, %v1213_v7 }
   0xd   :  { %1166 = vmatprep.mubr.msk.bf16.mxu0 %vm178_vm0, %v1214_v8 }
  0x14   :  { %1167 = vmatmul.mubr.msk.bf16.gmra.mrb[4].mxu0 %vm178_vm0, %v1215_v9 }
  0x15   :  { %1170 = vmatprep.mubr.msk.bf16.mxu0 %vm178_vm0, %v1216_v10 }
  0x1c   :  { %1171 = vmatmul.mubr.msk.bf16.gmra.mrb[8].mxu0 %vm178_vm0, %v1217_v11 }
  0x1d   :  { %1174 = vmatprep.mubr.msk.bf16.mxu0 %vm178_vm0, %v1218_v12 }
  0x1e   :  { %13 = vsyncpa [#allocation4], 0  ;;  %v1219_v13 = vld [vmem:[%s1779_s1 + $0x38] sm:$0xff]   ;;  %v1220_v14 = vld [vmem:[%s1779_s1 + $0x40] sm:$0xff]   ;;  %s1302_s22 = smov [#allocation3]   ;;  %vm924_vm2 = vcmask 0  }
  0x1f   :  { %v1221_v15 = vld [vmem:[%s1779_s1 + $0x48] sm:$0xff]   ;;  %v1222_v16 = vld [vmem:[%s1779_s1 + $0x50] sm:$0xff]   ;;  %v1223_v17 = vld [vmem:[%s1779_s1 + $0x58] sm:$0xff]   ;;  %s932_s23 = sshll.u32 %s1302_s22, 4  ;;  %s933_s23 = int_to_ptr.vmem [resolvable:$true] %s932_s23 }
  0x20   :  { %v1224_v18 = vld [vmem:[%s1779_s1 + $0x60] sm:$0xff]   ;;  %v1225_v19 = vld [vmem:[%s1779_s1 + $0x68] sm:$0xff]   ;;  %v1226_v20 = vld [vmem:[%s1779_s1 + $0x70] sm:$0xff]   ;;  %s1278_s24 = scalar_lea.vmem %s933_s23, 16  ;;  %s1282_s25 = scalar_lea.vmem %s933_s23, 32 }
  0x21   :  { %v1227_v21 = vld [vmem:[%s1779_s1 + $0x78] sm:$0xff]   ;;  %v1242_v23 = vld [vmem:[%s1781_s3 + $0x4] ss:$8 sps:$4 sm:$0xff]   ;;  %v68_v24 = vld [vmem:[%s1780_s2 + $0x10] sm:$0xff]  ;;  %p1279_p0 = scmp.ne.s32.totalorder %s933_s23, %s1278_s24  ;;  %p1283_p1 = scmp.lt.s32.totalorder %s933_s23, %s933_s23 }
  0x22   :  { %v1230_v22 = vld [vmem:[%s1781_s3 + $0x54] ss:$8 sps:$4 sm:$0xff]   ;;  %v66_v25 = vld [vmem:[%s1780_s2] sm:$0xff]  ;;  %v67_v30 = vld [vmem:[%s1780_s2 + $0x8] sm:$0xff]  ;;  %p1284_p2 = scmp.lt.s32.totalorder %s1282_s25, %s1278_s24 }
  0x23   :  { %736 = vmatprep.mubr.bf16.mxu1 %v1230_v22  ;;  %v69_v27 = vld [vmem:[%s1780_s2 + $0x18] sm:$0xff]  ;;  %v72_v40 = vld [vmem:[%s1780_s2 + $0x30] sm:$0xff]  ;;  %v70_v42 = vld [vmem:[%s1780_s2 + $0x20] sm:$0xff] }
  0x24   :  { %1175 = vmatmul.mubr.msk.bf16.gmra.mrb[12].mxu0 %vm178_vm0, %v1219_v13  ;;  %v73_v45 = vld [vmem:[%s1780_s2 + $0x38] sm:$0xff]  ;;  %v71_v48 = vld [vmem:[%s1780_s2 + $0x28] sm:$0xff]  ;;  %v76_v58 = vld [vmem:[%s1780_s2 + $0x50] sm:$0xff]  ;;  %p1285_p3 = por %p1284_p2, %p1283_p1 }
  0x25   :  { %1178 = vmatprep.mubr.msk.bf16.mxu0 %vm178_vm0, %v1220_v14  ;;  %v74_v60 = vld [vmem:[%s1780_s2 + $0x40] sm:$0xff]  ;;  %v77_v63 = vld [vmem:[%s1780_s2 + $0x58] sm:$0xff]  ;;  %v75_v2 = vld [vmem:[%s1780_s2 + $0x48] sm:$0xff] }
  0x26   :  { %v80_v12 = vld [vmem:[%s1780_s2 + $0x70] sm:$0xff]  ;;  %v78_v14 = vld [vmem:[%s1780_s2 + $0x60] sm:$0xff]  ;;  %p1286_p4 = pnand %p1285_p3, %p1279_p0 }
  0x2c   :  { %1179 = vmatmul.mubr.msk.bf16.gmra.mrb[16].mxu0 %vm178_vm0, %v1221_v15 }
  0x2d   :  { %1182 = vmatprep.mubr.msk.bf16.mxu0 %vm178_vm0, %v1222_v16 }
  0x34   :  { %1183 = vmatmul.mubr.msk.bf16.gmra.mrb[20].mxu0 %vm178_vm0, %v1223_v17  ;;  %v81_v17 = vld [vmem:[%s1780_s2 + $0x78] sm:$0xff] }
  0x35   :  { %1186 = vmatprep.mubr.msk.bf16.mxu0 %vm178_vm0, %v1224_v18 }
  0x3c   :  { %1187 = vmatmul.mubr.msk.bf16.gmra.mrb[24].mxu0 %vm178_vm0, %v1225_v19 }
  0x3d   :  { %1190 = vmatprep.mubr.msk.bf16.mxu0 %vm178_vm0, %v1226_v20  ;;  %v79_v20 = vld [vmem:[%s1780_s2 + $0x68] sm:$0xff] }
  0x44   :  { %1191 = vmatmul.mubr.msk.bf16.gmra.mrb[28].mxu0 %vm178_vm0, %v1227_v21 }
  0x45   :  { %696 = vmatprep.mubr.bf16.mxu0 %v1242_v23 }
  0xdf   :  { %v1164_v26 = vpop.f32.mrb[0].mxu0 }
  0xe0   :  { %v274_v28 = vadd.f32 %v1164_v26, %v68_v24  ;;  %v265_v29 = vpop.f32.mrb[1].mxu0 }
  0xe1   :  { %v266_v31 = vadd.f32 %v265_v29, %v66_v25  ;;  %v1165_v32 = vpop.f32.mrb[2].mxu0 }
  0xe2   :  { %v277_v33 = vadd.f32 %v1165_v32, %v69_v27  ;;  %v268_v34 = vpop.f32.mrb[3].mxu0  ;;  %v394_v36 = vmax.f32 %v274_v28, 0.0  ;;  %v82_v32 = vld [vmem:[%s1780_s2 + $0x80] sm:$0xff] }
  0xe3   :  { %v269_v35 = vadd.f32 %v268_v34, %v67_v30  ;;  %v392_v38 = vmax.f32 %v266_v31, 0.0  ;;  %v84_v30 = vld [vmem:[%s1780_s2 + $0x90] sm:$0xff] }
  0xe4   :  { %v395_v37 = vmax.f32 %v277_v33, 0.0 }
  0xe5   :  { %v393_v39 = vmax.f32 %v269_v35, 0.0  ;;  %v85_v35 = vld [vmem:[%s1780_s2 + $0x98] sm:$0xff] }
  0xe6   :  { %v1437_v41 = vpack.c.bf16 %v395_v37, %v394_v36 }
  0xe7   :  { %v1442_v43 = vpack.c.bf16 %v393_v39, %v392_v38  ;;  %v1168_v44 = vpop.f32.mrb[4].mxu0  ;;  %v83_v38 = vld [vmem:[%s1780_s2 + $0x88] sm:$0xff] }
  0xe8   :  { %v290_v46 = vadd.f32 %v1168_v44, %v72_v40  ;;  %v281_v47 = vpop.f32.mrb[5].mxu0 }
  0xe9   :  { %v282_v49 = vadd.f32 %v281_v47, %v70_v42  ;;  %v1169_v50 = vpop.f32.mrb[6].mxu0 }
  0xea   :  { %v293_v51 = vadd.f32 %v1169_v50, %v73_v45  ;;  %v284_v52 = vpop.f32.mrb[7].mxu0  ;;  %v398_v54 = vmax.f32 %v290_v46, 0.0  ;;  %v88_v50 = vld [vmem:[%s1780_s2 + $0xb0] sm:$0xff] }
  0xeb   :  { %v285_v53 = vadd.f32 %v284_v52, %v71_v48  ;;  %v396_v56 = vmax.f32 %v282_v49, 0.0  ;;  %v86_v52 = vld [vmem:[%s1780_s2 + $0xa0] sm:$0xff] }
  0xec   :  { %v399_v55 = vmax.f32 %v293_v51, 0.0 }
  0xed   :  { %v397_v57 = vmax.f32 %v285_v53, 0.0 }
  0xee   :  { %v1453_v59 = vpack.c.bf16 %v399_v55, %v398_v54  ;;  %v89_v55 = vld [vmem:[%s1780_s2 + $0xb8] sm:$0xff] }
  0xef   :  { %v1458_v61 = vpack.c.bf16 %v397_v57, %v396_v56  ;;  %v1172_v62 = vpop.f32.mrb[8].mxu0 }
  0xf0   :  { %v306_v0 = vadd.f32 %v1172_v62, %v76_v58  ;;  %v297_v1 = vpop.f32.mrb[9].mxu0  ;;  %v87_v58 = vld [vmem:[%s1780_s2 + $0xa8] sm:$0xff] }
  0xf1   :  { %v298_v3 = vadd.f32 %v297_v1, %v74_v60  ;;  %v1173_v4 = vpop.f32.mrb[10].mxu0 }
  0xf2   :  { %v309_v5 = vadd.f32 %v1173_v4, %v77_v63  ;;  %v300_v6 = vpop.f32.mrb[11].mxu0  ;;  %v402_v8 = vmax.f32 %v306_v0, 0.0 }
  0xf3   :  { %v301_v7 = vadd.f32 %v300_v6, %v75_v2  ;;  %v400_v10 = vmax.f32 %v298_v3, 0.0  ;;  %v92_v6 = vld [vmem:[%s1780_s2 + $0xd0] sm:$0xff] }
  0xf4   :  { %v403_v9 = vmax.f32 %v309_v5, 0.0 }
  0xf5   :  { %v401_v11 = vmax.f32 %v301_v7, 0.0 }
  0xf6   :  { %v1469_v13 = vpack.c.bf16 %v403_v9, %v402_v8 }
  0xf7   :  { %v1474_v15 = vpack.c.bf16 %v401_v11, %v400_v10  ;;  %v1176_v16 = vpop.f32.mrb[12].mxu0  ;;  %v93_v10 = vld [vmem:[%s1780_s2 + $0xd8] sm:$0xff] }
  0xf8   :  { %v322_v18 = vadd.f32 %v1176_v16, %v80_v12  ;;  %v313_v19 = vpop.f32.mrb[13].mxu0 }
  0xf9   :  { %v314_v21 = vadd.f32 %v313_v19, %v78_v14  ;;  %v1177_v22 = vpop.f32.mrb[14].mxu0  ;;  %v91_v14 = vld [vmem:[%s1780_s2 + $0xc8] sm:$0xff] }
  0xfa   :  { %v325_v23 = vadd.f32 %v1177_v22, %v81_v17  ;;  %v316_v24 = vpop.f32.mrb[15].mxu0  ;;  %v406_v26 = vmax.f32 %v322_v18, 0.0 }
  0xfb   :  { %v317_v25 = vadd.f32 %v316_v24, %v79_v20  ;;  %v404_v28 = vmax.f32 %v314_v21, 0.0  ;;  %v96_v24 = vld [vmem:[%s1780_s2 + $0xf0] sm:$0xff] }
  0xfc   :  { %v407_v27 = vmax.f32 %v325_v23, 0.0 }
  0xfd   :  { %v405_v29 = vmax.f32 %v317_v25, 0.0 }
  0xfe   :  { %v1485_v31 = vpack.c.bf16 %v407_v27, %v406_v26 }
  0xff   :  { %v1490_v33 = vpack.c.bf16 %v405_v29, %v404_v28  ;;  %v1180_v34 = vpop.f32.mrb[16].mxu0  ;;  %v97_v28 = vld [vmem:[%s1780_s2 + $0xf8] sm:$0xff] }
 0x100   :  { %v338_v36 = vadd.f32 %v1180_v34, %v84_v30  ;;  %v329_v37 = vpop.f32.mrb[17].mxu0 }
 0x101   :  { %v330_v39 = vadd.f32 %v329_v37, %v82_v32  ;;  %v1181_v40 = vpop.f32.mrb[18].mxu0  ;;  %v95_v32 = vld [vmem:[%s1780_s2 + $0xe8] sm:$0xff] }
 0x102   :  { %v341_v42 = vadd.f32 %v1181_v40, %v85_v35  ;;  %v332_v44 = vpop.f32.mrb[19].mxu0  ;;  %v410_v46 = vmax.f32 %v338_v36, 0.0 }
 0x103   :  { %v333_v45 = vadd.f32 %v332_v44, %v83_v38  ;;  %v408_v48 = vmax.f32 %v330_v39, 0.0 }
 0x104   :  { %v411_v47 = vmax.f32 %v341_v42, 0.0 }
 0x105   :  { %v409_v49 = vmax.f32 %v333_v45, 0.0 }
 0x106   :  { %v465_v51 = vpack.c.bf16 %v411_v47, %v410_v46  ;;  %v1240_v46 = vld [vmem:[%s1781_s3] ss:$8 sps:$4 sm:$0xff]  }
 0x107   :  { %v464_v53 = vpack.c.bf16 %v409_v49, %v408_v48  ;;  %v1184_v54 = vpop.f32.mrb[20].mxu0  ;;  %v1233_v47 = vld [vmem:[%s1781_s3 + $0x60] ss:$8 sps:$4 sm:$0xff]   ;;  %v1234_v48 = vld [vmem:[%s1781_s3 + $0x74] ss:$8 sps:$4 sm:$0xff]  }
 0x108   :  { %v354_v56 = vadd.f32 %v1184_v54, %v88_v50  ;;  %v345_v57 = vpop.f32.mrb[21].mxu0  ;;  %v1252_v49 = vld [vmem:[%s1781_s3 + $0x24] ss:$8 sps:$4 sm:$0xff]   ;;  %v1236_v50 = vld [vmem:[%s1781_s3 + $0x70] ss:$8 sps:$4 sm:$0xff]  }
 0x109   :  { %v346_v60 = vadd.f32 %v345_v57, %v86_v52  ;;  %v1185_v62 = vpop.f32.mrb[22].mxu0  ;;  %1024 = vmatprep.subr.bf16.mxu0 %v464_v53  ;;  %1194 = vmatprep.subr.bf16.mxu1 %v464_v53  ;;  %v1237_v52 = vld [vmem:[%s1781_s3 + $0x84] ss:$8 sps:$4 sm:$0xff]   ;;  %v1258_v53 = vld [vmem:[%s1781_s3 + $0x34] ss:$8 sps:$4 sm:$0xff]  }
 0x10a   :  { %v357_v63 = vadd.f32 %v1185_v62, %v89_v55  ;;  %v348_v0 = vpop.f32.mrb[23].mxu0  ;;  %1025 = vmatpush3.bf16.msra.mxu0 %v1442_v43  ;;  %1202 = vmatpush3.bf16.msra.mxu1 %v1442_v43  ;;  %v414_v2 = vmax.f32 %v354_v56, 0.0  ;;  %v90_v43 = vld [vmem:[%s1780_s2 + $0xc0] sm:$0xff]  ;;  %v1260_v55 = vld [vmem:[%s1781_s3 + $0x30] ss:$8 sps:$4 sm:$0xff]  }
 0x10b   :  { %v349_v1 = vadd.f32 %v348_v0, %v87_v58  ;;  %1026 = vmatprep.subr.bf16.mxu0 %v465_v51  ;;  %1195 = vmatprep.subr.bf16.mxu1 %v465_v51  ;;  %v412_v4 = vmax.f32 %v346_v60, 0.0  ;;  %v1254_v51 = vld [vmem:[%s1781_s3 + $0x20] ss:$8 sps:$4 sm:$0xff]   ;;  %v1243_v56 = vld [vmem:[%s1781_s3 + $0x94] ss:$8 sps:$4 sm:$0xff]  }
 0x10c   :  { %v415_v3 = vmax.f32 %v357_v63, 0.0  ;;  %v1239_v54 = vld [vmem:[%s1781_s3 + $0x80] ss:$8 sps:$4 sm:$0xff]   ;;  %v1264_v57 = vld [vmem:[%s1781_s3 + $0x44] ss:$8 sps:$4 sm:$0xff]  }
 0x10d   :  { %v413_v5 = vmax.f32 %v349_v1, 0.0  ;;  %v1245_v58 = vld [vmem:[%s1781_s3 + $0x90] ss:$8 sps:$4 sm:$0xff]   ;;  %v1266_v60 = vld [vmem:[%s1781_s3 + $0x40] ss:$8 sps:$4 sm:$0xff]  }
 0x10e   :  { %v467_v7 = vpack.c.bf16 %v415_v3, %v414_v2  ;;  %1027 = vmatpush3.bf16.msra.mxu0 %v1437_v41  ;;  %1203 = vmatpush3.bf16.msra.mxu1 %v1437_v41  ;;  %v1249_v62 = vld [vmem:[%s1781_s3 + $0xa4] ss:$8 sps:$4 sm:$0xff]   ;;  %v1251_v63 = vld [vmem:[%s1781_s3 + $0xa0] ss:$8 sps:$4 sm:$0xff]   ;;  %v1255_v0 = vld [vmem:[%s1781_s3 + $0xb4] ss:$8 sps:$4 sm:$0xff]  }
 0x10f   :  { %v466_v8 = vpack.c.bf16 %v413_v5, %v412_v4  ;;  %v1188_v9 = vpop.f32.mrb[24].mxu0  ;;  %v1257_v1 = vld [vmem:[%s1781_s3 + $0xb0] ss:$8 sps:$4 sm:$0xff]   ;;  %v1261_v2 = vld [vmem:[%s1781_s3 + $0xc4] ss:$8 sps:$4 sm:$0xff]  }
 0x110   :  { %v370_v11 = vadd.f32 %v1188_v9, %v92_v6  ;;  %v361_v12 = vpop.f32.mrb[25].mxu0  ;;  %v1263_v3 = vld [vmem:[%s1781_s3 + $0xc0] ss:$8 sps:$4 sm:$0xff]   ;;  %v1267_v4 = vld [vmem:[%s1781_s3 + $0xd4] ss:$8 sps:$4 sm:$0xff]  }
 0x111   :  { %v362_v16 = vadd.f32 %v361_v12, %v90_v43  ;;  %v1189_v17 = vpop.f32.mrb[26].mxu0  ;;  %1028 = vmatprep.subr.bf16.mxu0 %v466_v8  ;;  %1196 = vmatprep.subr.bf16.mxu1 %v466_v8  ;;  %v1269_v5 = vld [vmem:[%s1781_s3 + $0xd0] ss:$8 sps:$4 sm:$0xff]   ;;  %v1270_v6 = vld [vmem:[%s1781_s3 + $0xe4] ss:$8 sps:$4 sm:$0xff]  }
 0x112   :  { %v373_v41 = vadd.f32 %v1189_v17, %v93_v10  ;;  %v364_v18 = vpop.f32.mrb[27].mxu0  ;;  %1029 = vmatpush3.bf16.msra.mxu0 %v1458_v61  ;;  %1204 = vmatpush3.bf16.msra.mxu1 %v1458_v61  ;;  %v418_v20 = vmax.f32 %v370_v11, 0.0  ;;  %v94_v61 = vld [vmem:[%s1780_s2 + $0xe0] sm:$0xff]  ;;  %v1273_v43 = vld [vmem:[%s1781_s3 + $0xf4] ss:$8 sps:$4 sm:$0xff]  }
 0x113   :  { %v365_v19 = vadd.f32 %v364_v18, %v91_v14  ;;  %1030 = vmatprep.subr.bf16.mxu0 %v467_v7  ;;  %1197 = vmatprep.subr.bf16.mxu1 %v467_v7  ;;  %v416_v22 = vmax.f32 %v362_v16, 0.0  ;;  %v1272_v7 = vld [vmem:[%s1781_s3 + $0xe0] ss:$8 sps:$4 sm:$0xff]   ;;  %v1275_v8 = vld [vmem:[%s1781_s3 + $0xf0] ss:$8 sps:$4 sm:$0xff]  }
 0x114   :  { %v419_v21 = vmax.f32 %v373_v41, 0.0  ;;  %v1643_v9 = vld [vmem:[%s1783_s5] sm:$0xff]  ;;  %v482_v14 = vld [vmem:[%s1782_s4 + $0x50] sm:$0xff] }
 0x115   :  { %v417_v23 = vmax.f32 %v365_v19, 0.0  ;;  %v1005_v10 = vcombine.high %v1643_v9, %v1643_v9  ;;  %v472_v17 = vld [vmem:[%s1782_s4] sm:$0xff] }
 0x116   :  { %v469_v25 = vpack.c.bf16 %v419_v21, %v418_v20  ;;  %1031 = vmatpush3.bf16.msra.mxu0 %v1453_v59  ;;  %1205 = vmatpush3.bf16.msra.mxu1 %v1453_v59 }
 0x117   :  { %v468_v26 = vpack.c.bf16 %v417_v23, %v416_v22  ;;  %v1192_v27 = vpop.f32.mrb[28].mxu0  ;;  %v483_v22 = vld [vmem:[%s1782_s4 + $0x58] sm:$0xff] }
 0x118   :  { %v386_v29 = vadd.f32 %v1192_v27, %v96_v24  ;;  %v377_v30 = vpop.f32.mrb[29].mxu0  ;;  %v473_v24 = vld [vmem:[%s1782_s4 + $0x8] sm:$0xff] }
 0x119   :  { %v378_v34 = vadd.f32 %v377_v30, %v94_v61  ;;  %v1193_v35 = vpop.f32.mrb[30].mxu0  ;;  %1032 = vmatprep.subr.bf16.mxu0 %v468_v26  ;;  %1198 = vmatprep.subr.bf16.mxu1 %v468_v26 }
 0x11a   :  { %v389_v59 = vadd.f32 %v1193_v35, %v97_v28  ;;  %v380_v36 = vpop.f32.mrb[31].mxu0  ;;  %1033 = vmatpush3.bf16.msra.mxu0 %v1474_v15  ;;  %1206 = vmatpush3.bf16.msra.mxu1 %v1474_v15  ;;  %v422_v38 = vmax.f32 %v386_v29, 0.0  ;;  %v1228_v15 = vld [vmem:[%s1781_s3 + $0x50] ss:$8 sps:$4 sm:$0xff]  }
 0x11b   :  { %v381_v37 = vadd.f32 %v380_v36, %v95_v32  ;;  %1034 = vmatprep.subr.bf16.mxu0 %v469_v25  ;;  %1199 = vmatprep.subr.bf16.mxu1 %v469_v25  ;;  %v420_v40 = vmax.f32 %v378_v34, 0.0 }
 0x11c   :  { %v423_v39 = vmax.f32 %v389_v59, 0.0 }
 0x11d   :  { %v421_v42 = vmax.f32 %v381_v37, 0.0 }
 0x11e   :  { %v471_v44 = vpack.c.bf16 %v423_v39, %v422_v38  ;;  %1035 = vmatpush3.bf16.msra.mxu0 %v1469_v13  ;;  %1207 = vmatpush3.bf16.msra.mxu1 %v1469_v13  ;;  %v1231_v13 = vld [vmem:[%s1781_s3 + $0x64] ss:$8 sps:$4 sm:$0xff]  }
 0x11f   :  { %v470_v45 = vpack.c.bf16 %v421_v42, %v420_v40  ;;  %v484_v38 = vld [vmem:[%s1782_s4 + $0x60] sm:$0xff]  ;;  %v474_v40 = vld [vmem:[%s1782_s4 + $0x10] sm:$0xff] }
 0x121   :  { %1036 = vmatprep.subr.bf16.mxu0 %v470_v45  ;;  %1200 = vmatprep.subr.bf16.mxu1 %v470_v45 }
 0x122   :  { %1037 = vmatpush3.bf16.msra.mxu0 %v1490_v33  ;;  %1208 = vmatpush3.bf16.msra.mxu1 %v1490_v33  ;;  %v1246_v33 = vld [vmem:[%s1781_s3 + $0x14] ss:$8 sps:$4 sm:$0xff]  }
 0x123   :  { %1038 = vmatprep.subr.bf16.mxu0 %v471_v44  ;;  %1201 = vmatprep.subr.bf16.mxu1 %v471_v44 }
 0x126   :  { %1039 = vmatpush3.bf16.msra.mxu0 %v1485_v31  ;;  %1209 = vmatpush3.bf16.msra.mxu1 %v1485_v31  ;;  %v1248_v31 = vld [vmem:[%s1781_s3 + $0x10] ss:$8 sps:$4 sm:$0xff]  }
 0x129   :  { %737 = vmatmul.mubr.bf16.vlgmr.msra.gmra.mrb[0].mxu1 %v1228_v15  ;;  %697 = vmatmul.mubr.bf16.vlgmr.msra.gmra.mrb[32].mxu0 %v1240_v46 }
 0x12a   :  { %744 = vmatprep.mubr.bf16.mxu1 %v1231_v13  ;;  %704 = vmatprep.mubr.bf16.mxu0 %v1246_v33 }
 0x131   :  { %745 = vmatmul.mubr.bf16.gmra.mrb[4].mxu1 %v1233_v47  ;;  %705 = vmatmul.mubr.bf16.gmra.mrb[36].mxu0 %v1248_v31  ;;  %v485_v47 = vld [vmem:[%s1782_s4 + $0x68] sm:$0xff] }
 0x132   :  { %752 = vmatprep.mubr.bf16.mxu1 %v1234_v48  ;;  %712 = vmatprep.mubr.bf16.mxu0 %v1252_v49  ;;  %v475_v48 = vld [vmem:[%s1782_s4 + $0x18] sm:$0xff] }
 0x139   :  { %753 = vmatmul.mubr.bf16.gmra.mrb[8].mxu1 %v1236_v50  ;;  %713 = vmatmul.mubr.bf16.gmra.mrb[40].mxu0 %v1254_v51 }
 0x13a   :  { %760 = vmatprep.mubr.bf16.mxu1 %v1237_v52  ;;  %720 = vmatprep.mubr.bf16.mxu0 %v1258_v53 }
 0x141   :  { %761 = vmatmul.mubr.bf16.gmra.mrb[12].mxu1 %v1239_v54  ;;  %721 = vmatmul.mubr.bf16.gmra.mrb[44].mxu0 %v1260_v55 }
 0x142   :  { %768 = vmatprep.mubr.bf16.mxu1 %v1243_v56  ;;  %728 = vmatprep.mubr.bf16.mxu0 %v1264_v57 }
 0x149   :  { %769 = vmatmul.mubr.bf16.gmra.mrb[16].mxu1 %v1245_v58  ;;  %729 = vmatmul.mubr.bf16.gmra.mrb[48].mxu0 %v1266_v60 }
 0x14a   :  { %776 = vmatprep.mubr.bf16.mxu1 %v1249_v62  ;;  %913 = vmatprep.mubr.bf16.mxu0 %v1005_v10  ;;  %v487_v10 = vld [vmem:[%s1782_s4 + $0x78] sm:$0xff] }
 0x151   :  { %777 = vmatmul.mubr.bf16.gmra.mrb[20].mxu1 %v1251_v63 }
 0x152   :  { %784 = vmatprep.mubr.bf16.mxu1 %v1255_v0  ;;  %v486_v0 = vld [vmem:[%s1782_s4 + $0x70] sm:$0xff] }
 0x159   :  { %785 = vmatmul.mubr.bf16.gmra.mrb[24].mxu1 %v1257_v1 }
 0x15a   :  { %792 = vmatprep.mubr.bf16.mxu1 %v1261_v2  ;;  %v476_v2 = vld [vmem:[%s1782_s4 + $0x20] sm:$0xff] }
 0x161   :  { %793 = vmatmul.mubr.bf16.gmra.mrb[28].mxu1 %v1263_v3 }
 0x162   :  { %800 = vmatprep.mubr.bf16.mxu1 %v1267_v4 }
 0x169   :  { %801 = vmatmul.mubr.bf16.gmra.mrb[32].mxu1 %v1269_v5 }
 0x16a   :  { %808 = vmatprep.mubr.bf16.mxu1 %v1270_v6 }
 0x171   :  { %809 = vmatmul.mubr.bf16.gmra.mrb[36].mxu1 %v1272_v7 }
 0x172   :  { %816 = vmatprep.mubr.bf16.mxu1 %v1273_v43 }
 0x179   :  { %817 = vmatmul.mubr.bf16.gmra.mrb[40].mxu1 %v1275_v8 }
 0x1fc   :  { %v1070_v11 = vpop.f32.mrb[0].mxu1  ;;  %v1040_v12 = vpop.f32.mrb[32].mxu0 }
 0x1fd   :  { %v1071_v16 = vpop.f32.mrb[1].mxu1  ;;  %v1041_v41 = vpop.f32.mrb[33].mxu0 }
 0x1fe   :  { %v1072_v18 = vadd.f32 %v1071_v16, %v1070_v11  ;;  %v1073_v19 = vpop.f32.mrb[2].mxu1  ;;  %v1042_v20 = vadd.f32 %v1041_v41, %v1040_v12  ;;  %v1043_v21 = vpop.f32.mrb[34].mxu0  ;;  %v477_v12 = vld [vmem:[%s1782_s4 + $0x28] sm:$0xff] }
 0x1ff   :  { %v1074_v23 = vpop.f32.mrb[3].mxu1  ;;  %v1044_v25 = vpop.f32.mrb[35].mxu0 }
 0x200   :  { %v739_v61 = vadd.f32 %v1072_v18, %v482_v14  ;;  %v1075_v26 = vadd.f32 %v1074_v23, %v1073_v19  ;;  %v699_v27 = vadd.f32 %v1042_v20, %v472_v17  ;;  %v1045_v28 = vadd.f32 %v1044_v25, %v1043_v21 }
 0x202   :  { %v742_v29 = vadd.f32 %v1075_v26, %v483_v22  ;;  %v825_v30 = vmax.f32 %v699_v27, 0.0  ;;  %v702_v32 = vadd.f32 %v1045_v28, %v473_v24  ;;  %v835_v34 = vmax.f32 %v739_v61, 0.0  ;;  %v488_v26 = vld [vmem:[%s1782_s4 + $0x80] sm:$0xff]  ;;  %v478_v28 = vld [vmem:[%s1782_s4 + $0x30] sm:$0xff] }
 0x204   :  { %v836_v35 = vmax.f32 %v742_v29, 0.0  ;;  %v1076_v59 = vpop.f32.mrb[4].mxu1  ;;  %v826_v36 = vmax.f32 %v702_v32, 0.0  ;;  %v1046_v37 = vpop.f32.mrb[36].mxu0 }
 0x205   :  { %v1077_v39 = vpop.f32.mrb[5].mxu1  ;;  %v1047_v42 = vpop.f32.mrb[37].mxu0 }
 0x206   :  { %v1665_v44 = vpack.c.bf16 %v836_v35, %v835_v34  ;;  %v1078_v45 = vadd.f32 %v1077_v39, %v1076_v59  ;;  %v1079_v15 = vpop.f32.mrb[6].mxu1  ;;  %v1667_v46 = vpack.c.bf16 %v826_v36, %v825_v30  ;;  %v1048_v13 = vadd.f32 %v1047_v42, %v1046_v37  ;;  %v1049_v33 = vpop.f32.mrb[38].mxu0  ;;  %v489_v37 = vld [vmem:[%s1782_s4 + $0x88] sm:$0xff]  ;;  %v479_v39 = vld [vmem:[%s1782_s4 + $0x38] sm:$0xff] }
 0x207   :  { %v1080_v31 = vpop.f32.mrb[7].mxu1  ;;  %v1050_v49 = vpop.f32.mrb[39].mxu0 }
 0x208   :  { %v747_v50 = vadd.f32 %v1078_v45, %v484_v38  ;;  %v1081_v51 = vadd.f32 %v1080_v31, %v1079_v15  ;;  %v707_v52 = vadd.f32 %v1048_v13, %v474_v40  ;;  %v1051_v53 = vadd.f32 %v1050_v49, %v1049_v33 }
 0x20a   :  { %v750_v54 = vadd.f32 %v1081_v51, %v485_v47  ;;  %v827_v55 = vmax.f32 %v707_v52, 0.0  ;;  %v710_v56 = vadd.f32 %v1051_v53, %v475_v48  ;;  %v837_v57 = vmax.f32 %v747_v50, 0.0  ;;  %v490_v53 = vld [vmem:[%s1782_s4 + $0x90] sm:$0xff] }
 0x20c   :  { %v838_v58 = vmax.f32 %v750_v54, 0.0  ;;  %v1082_v60 = vpop.f32.mrb[8].mxu1  ;;  %v828_v62 = vmax.f32 %v710_v56, 0.0  ;;  %v1052_v63 = vpop.f32.mrb[40].mxu0 }
 0x20d   :  { %v1083_v1 = vpop.f32.mrb[9].mxu1  ;;  %v1053_v3 = vpop.f32.mrb[41].mxu0 }
 0x20e   :  { %v1681_v4 = vpack.c.bf16 %v838_v58, %v837_v57  ;;  %v1084_v5 = vadd.f32 %v1083_v1, %v1082_v60  ;;  %v1085_v6 = vpop.f32.mrb[10].mxu1  ;;  %v1683_v7 = vpack.c.bf16 %v828_v62, %v827_v55  ;;  %v1054_v43 = vadd.f32 %v1053_v3, %v1052_v63  ;;  %v1055_v8 = vpop.f32.mrb[42].mxu0  ;;  %v480_v55 = vld [vmem:[%s1782_s4 + $0x40] sm:$0xff]  ;;  %v491_v1 = vld [vmem:[%s1782_s4 + $0x98] sm:$0xff]  ;;  %v481_v3 = vld [vmem:[%s1782_s4 + $0x48] sm:$0xff] }
 0x20f   :  { %v1086_v11 = vpop.f32.mrb[11].mxu1  ;;  %v1056_v14 = vpop.f32.mrb[43].mxu0 }
 0x210   :  { %v755_v16 = vadd.f32 %v1084_v5, %v486_v0  ;;  %v1087_v17 = vadd.f32 %v1086_v11, %v1085_v6  ;;  %v715_v41 = vadd.f32 %v1054_v43, %v476_v2  ;;  %v1057_v18 = vadd.f32 %v1056_v14, %v1055_v8 }
 0x212   :  { %v758_v19 = vadd.f32 %v1087_v17, %v487_v10  ;;  %v829_v20 = vmax.f32 %v715_v41, 0.0  ;;  %v718_v21 = vadd.f32 %v1057_v18, %v477_v12  ;;  %v839_v22 = vmax.f32 %v755_v16, 0.0 }
 0x214   :  { %v840_v23 = vmax.f32 %v758_v19, 0.0  ;;  %v1088_v24 = vpop.f32.mrb[12].mxu1  ;;  %v830_v25 = vmax.f32 %v718_v21, 0.0  ;;  %v1058_v61 = vpop.f32.mrb[44].mxu0  ;;  %v492_v19 = vld [vmem:[%s1782_s4 + $0xa0] sm:$0xff] }
 0x215   :  { %v1089_v27 = vpop.f32.mrb[13].mxu1  ;;  %v1059_v29 = vpop.f32.mrb[45].mxu0 }
 0x216   :  { %v1697_v30 = vpack.c.bf16 %v840_v23, %v839_v22  ;;  %v1090_v32 = vadd.f32 %v1089_v27, %v1088_v24  ;;  %v1091_v34 = vpop.f32.mrb[14].mxu1  ;;  %v1699_v35 = vpack.c.bf16 %v830_v25, %v829_v20  ;;  %v1060_v59 = vadd.f32 %v1059_v29, %v1058_v61  ;;  %v1061_v36 = vpop.f32.mrb[46].mxu0 }
 0x217   :  { %v1092_v38 = vpop.f32.mrb[15].mxu1  ;;  %v1062_v40 = vpop.f32.mrb[47].mxu0 }
 0x218   :  { %v763_v42 = vadd.f32 %v1090_v32, %v488_v26  ;;  %v1093_v45 = vadd.f32 %v1092_v38, %v1091_v34  ;;  %v723_v15 = vadd.f32 %v1060_v59, %v478_v28  ;;  %v1063_v13 = vadd.f32 %v1062_v40, %v1061_v36  ;;  %v494_v34 = vld [vmem:[%s1782_s4 + $0xb0] sm:$0xff] }
 0x21a   :  { %v766_v33 = vadd.f32 %v1093_v45, %v489_v37  ;;  %v831_v47 = vmax.f32 %v723_v15, 0.0  ;;  %v726_v31 = vadd.f32 %v1063_v13, %v479_v39  ;;  %v841_v48 = vmax.f32 %v763_v42, 0.0  ;;  %v495_v39 = vld [vmem:[%s1782_s4 + $0xb8] sm:$0xff] }
 0x21c   :  { %v842_v49 = vmax.f32 %v766_v33, 0.0  ;;  %v1094_v50 = vpop.f32.mrb[16].mxu1  ;;  %v832_v51 = vmax.f32 %v726_v31, 0.0  ;;  %v1064_v52 = vpop.f32.mrb[48].mxu0 }
 0x21d   :  { %v1095_v54 = vpop.f32.mrb[17].mxu1  ;;  %v1065_v56 = vpop.f32.mrb[49].mxu0 }
 0x21e   :  { %v1096_v57 = vadd.f32 %v1095_v54, %v1094_v50  ;;  %v1097_v58 = vpop.f32.mrb[18].mxu1  ;;  %v866_v60 = vpack.c.bf16 %v842_v49, %v841_v48  ;;  %v861_v62 = vpack.c.bf16 %v832_v51, %v831_v47  ;;  %v1066_v63 = vadd.f32 %v1065_v56, %v1064_v52  ;;  %v1067_v0 = vpop.f32.mrb[50].mxu0  ;;  %v496_v47 = vld [vmem:[%s1782_s4 + $0xc0] sm:$0xff]  ;;  %v497_v51 = vld [vmem:[%s1782_s4 + $0xc8] sm:$0xff] }
 0x21f   :  { %v1098_v2 = vpop.f32.mrb[19].mxu1  ;;  %v1068_v5 = vpop.f32.mrb[51].mxu0 }
 0x220   :  { %v771_v6 = vadd.f32 %v1096_v57, %v490_v53  ;;  %v1099_v43 = vadd.f32 %v1098_v2, %v1097_v58  ;;  %1136 = vmatprep.subr.bf16.mxu0 %v866_v60  ;;  %v731_v8 = vadd.f32 %v1066_v63, %v480_v55  ;;  %v1069_v10 = vadd.f32 %v1068_v5, %v1067_v0  ;;  %v498_v58 = vld [vmem:[%s1782_s4 + $0xd0] sm:$0xff]  ;;  %v499_v2 = vld [vmem:[%s1782_s4 + $0xd8] sm:$0xff] }
 0x221   :  { %1137 = vmatpush3.bf16.msra.mxu0 %v1667_v46  ;;  %v493_v46 = vld [vmem:[%s1782_s4 + $0xa8] sm:$0xff] }
 0x222   :  { %v774_v11 = vadd.f32 %v1099_v43, %v491_v1  ;;  %v833_v12 = vmax.f32 %v731_v8, 0.0  ;;  %v734_v14 = vadd.f32 %v1069_v10, %v481_v3  ;;  %v843_v16 = vmax.f32 %v771_v6, 0.0 }
 0x224   :  { %v844_v17 = vmax.f32 %v774_v11, 0.0  ;;  %v1100_v41 = vpop.f32.mrb[20].mxu1  ;;  %v834_v18 = vmax.f32 %v734_v14, 0.0  ;;  %v500_v11 = vld [vmem:[%s1782_s4 + $0xe0] sm:$0xff] }
 0x225   :  { %v1101_v20 = vpop.f32.mrb[21].mxu1 }
 0x226   :  { %v1102_v21 = vadd.f32 %v1101_v20, %v1100_v41  ;;  %v1103_v22 = vpop.f32.mrb[22].mxu1  ;;  %v867_v23 = vpack.c.bf16 %v844_v17, %v843_v16  ;;  %v862_v24 = vpack.c.bf16 %v834_v18, %v833_v12  ;;  %v501_v41 = vld [vmem:[%s1782_s4 + $0xe8] sm:$0xff] }
 0x227   :  { %v1104_v25 = vpop.f32.mrb[23].mxu1 }
 0x228   :  { %v779_v61 = vadd.f32 %v1102_v21, %v492_v19  ;;  %v1105_v26 = vadd.f32 %v1104_v25, %v1103_v22  ;;  %1138 = vmatprep.subr.bf16.mxu0 %v867_v23 }
 0x229   :  { %1139 = vmatpush3.bf16.msra.mxu0 %v1683_v7 }
 0x22a   :  { %v782_v27 = vadd.f32 %v1105_v26, %v493_v46  ;;  %v845_v28 = vmax.f32 %v779_v61, 0.0  ;;  %v502_v46 = vld [vmem:[%s1782_s4 + $0xf0] sm:$0xff] }
 0x22c   :  { %v846_v29 = vmax.f32 %v782_v27, 0.0  ;;  %v1106_v32 = vpop.f32.mrb[24].mxu1 }
 0x22d   :  { %v1107_v59 = vpop.f32.mrb[25].mxu1 }
 0x22e   :  { %v1108_v36 = vadd.f32 %v1107_v59, %v1106_v32  ;;  %v1109_v37 = vpop.f32.mrb[26].mxu1  ;;  %v868_v38 = vpack.c.bf16 %v846_v29, %v845_v28  ;;  %v503_v28 = vld [vmem:[%s1782_s4 + $0xf8] sm:$0xff] }
 0x22f   :  { %v1110_v40 = vpop.f32.mrb[27].mxu1 }
 0x230   :  { %v787_v42 = vadd.f32 %v1108_v36, %v494_v34  ;;  %v1111_v45 = vadd.f32 %v1110_v40, %v1109_v37  ;;  %1140 = vmatprep.subr.bf16.mxu0 %v868_v38  ;;  %v1004_v38 = vcombine.low %v1643_v9, %v1643_v9 }
 0x231   :  { %1141 = vmatpush3.bf16.msra.mxu0 %v1699_v35 }
 0x232   :  { %v790_v7 = vadd.f32 %v1111_v45, %v495_v39  ;;  %v847_v15 = vmax.f32 %v787_v42, 0.0  ;;  %v922_v42 = vstv %s1784_s6 }
 0x234   :  { %v848_v13 = vmax.f32 %v790_v7, 0.0  ;;  %v1112_v33 = vpop.f32.mrb[28].mxu1 }
 0x235   :  { %v1113_v31 = vpop.f32.mrb[29].mxu1 }
 0x236   :  { %v1114_v48 = vadd.f32 %v1113_v31, %v1112_v33  ;;  %v1115_v49 = vpop.f32.mrb[30].mxu1  ;;  %v869_v50 = vpack.c.bf16 %v848_v13, %v847_v15 }
 0x237   :  { %v1116_v52 = vpop.f32.mrb[31].mxu1 }
 0x238   :  { %v795_v53 = vadd.f32 %v1114_v48, %v496_v47  ;;  %v1117_v54 = vadd.f32 %v1116_v52, %v1115_v49  ;;  %1142 = vmatprep.subr.bf16.mxu0 %v869_v50 }
 0x239   :  { %1143 = vmatpush3.bf16.msra.mxu0 %v861_v62 }
 0x23a   :  { %v798_v35 = vadd.f32 %v1117_v54, %v497_v51  ;;  %v849_v55 = vmax.f32 %v795_v53, 0.0 }
 0x23c   :  { %v850_v56 = vmax.f32 %v798_v35, 0.0  ;;  %v1118_v57 = vpop.f32.mrb[32].mxu1 }
 0x23d   :  { %v1119_v60 = vpop.f32.mrb[33].mxu1 }
 0x23e   :  { %v1120_v63 = vadd.f32 %v1119_v60, %v1118_v57  ;;  %v1121_v0 = vpop.f32.mrb[34].mxu1  ;;  %v870_v1 = vpack.c.bf16 %v850_v56, %v849_v55 }
 0x23f   :  { %v1122_v3 = vpop.f32.mrb[35].mxu1 }
 0x240   :  { %v803_v5 = vadd.f32 %v1120_v63, %v498_v58  ;;  %v1123_v6 = vadd.f32 %v1122_v3, %v1121_v0  ;;  %1144 = vmatprep.subr.bf16.mxu0 %v870_v1 }
 0x241   :  { %1145 = vmatpush3.bf16.msra.mxu0 %v862_v24 }
 0x242   :  { %v806_v62 = vadd.f32 %v1123_v6, %v499_v2  ;;  %v851_v43 = vmax.f32 %v803_v5, 0.0 }
 0x244   :  { %v852_v8 = vmax.f32 %v806_v62, 0.0  ;;  %v1124_v10 = vpop.f32.mrb[36].mxu1 }
 0x245   :  { %v1125_v12 = vpop.f32.mrb[37].mxu1 }
 0x246   :  { %v1126_v14 = vadd.f32 %v1125_v12, %v1124_v10  ;;  %v1127_v16 = vpop.f32.mrb[38].mxu1  ;;  %v871_v17 = vpack.c.bf16 %v852_v8, %v851_v43 }
 0x247   :  { %v1128_v18 = vpop.f32.mrb[39].mxu1 }
 0x248   :  { %v811_v19 = vadd.f32 %v1126_v14, %v500_v11  ;;  %v1129_v20 = vadd.f32 %v1128_v18, %v1127_v16  ;;  %1146 = vmatprep.subr.bf16.mxu0 %v871_v17 }
 0x249   :  { %1147 = vmatpush3.bf16.msra.mxu0 %v1665_v44 }
 0x24a   :  { %v814_v21 = vadd.f32 %v1129_v20, %v501_v41  ;;  %v853_v22 = vmax.f32 %v811_v19, 0.0 }
 0x24c   :  { %v854_v23 = vmax.f32 %v814_v21, 0.0  ;;  %v1130_v24 = vpop.f32.mrb[40].mxu1 }
 0x24d   :  { %v1131_v25 = vpop.f32.mrb[41].mxu1 }
 0x24e   :  { %v1132_v61 = vadd.f32 %v1131_v25, %v1130_v24  ;;  %v1133_v26 = vpop.f32.mrb[42].mxu1  ;;  %v872_v27 = vpack.c.bf16 %v854_v23, %v853_v22 }
 0x24f   :  { %v1134_v29 = vpop.f32.mrb[43].mxu1 }
 0x250   :  { %v819_v32 = vadd.f32 %v1132_v61, %v502_v46  ;;  %v1135_v34 = vadd.f32 %v1134_v29, %v1133_v26  ;;  %1148 = vmatprep.subr.bf16.mxu0 %v872_v27 }
 0x251   :  { %1149 = vmatpush3.bf16.msra.mxu0 %v1681_v4 }
 0x252   :  { %v822_v44 = vadd.f32 %v1135_v34, %v503_v28  ;;  %v855_v59 = vmax.f32 %v819_v32, 0.0 }
 0x254   :  { %v856_v36 = vmax.f32 %v822_v44, 0.0 }
 0x256   :  { %v873_v37 = vpack.c.bf16 %v856_v36, %v855_v59 }
 0x258   :  { %1150 = vmatprep.subr.bf16.mxu0 %v873_v37 }
 0x259   :  { %1151 = vmatpush3.bf16.msra.mxu0 %v1697_v30 }
 0x25c   :  { %914 = vmatmul.mubr.bf16.vlgmr.msra.gmra.mrb[52].mxu0 %v1004_v38 }
 0x32f   :  { %v1152_v39 = vpop.f32.mrb[52].mxu0 }
 0x330   :  { %v1153_v40 = vpop.f32.mrb[53].mxu0 }
 0x331   :  { %v1154_v4 = vadd.f32 %v1153_v40, %v1152_v39  ;;  %v1155_v45 = vpop.f32.mrb[54].mxu0 }
 0x332   :  { %v1156_v7 = vpop.f32.mrb[55].mxu0 }
 0x333   :  { %v923_v15 = vadd.f32 %v1154_v4, %v922_v42 }
 0x335   :  { %925 = vst.msk [vmem:[#allocation3] sm:$0x1] %vm924_vm2, %v923_v15 }
 0x336   :  { %1289 = shalt.err (!%p1286_p4)
}
 0x337   :  { %s1290_s6 = scalar_lea.hbm %s1785_s7, 16 }
 0x338   :  { %p1291_p5 = scmp.ne.s32.totalorder %s1785_s7, %s1290_s6  ;;  %p1294_p6 = scmp.lt.u32.totalorder %s1290_s6, %s1785_s7 }
 0x33a   :  { %p1296_p7 = pnand %p1294_p6, %p1291_p5 }
 0x33c   :  { %1299 = shalt.err (!%p1296_p7)
}
 0x33d   :  { %935 = dma.vmem_to_hbm [thread:$0]  %s933_s23, 16, %s1785_s7, [#allocation4]  }
 0x33e   :  { %1300 = dma.done.wait [#allocation4], 16  }
 0x33f   :  { %1301 = vsyncadd [#allocation4], 4294967280 }
 0x340   :  { %939 = vsyncpa [#allocation4], 1 }

</bundles_post_ra>
